<compile_context>
chip_gen: v5e
topology: v5e:2x2
jax: 0.10.0
libtpu: 0.0.40
codegen_flags: <defaults>
</compile_context>

<pallas_src>
import functools

import jax
import jax.numpy as jnp
from jax.experimental import pallas as pl
from jax.experimental.pallas import tpu as pltpu

# Target per-block footprint (~4 MiB) → (2 in + 2 out) double buffers ≈ 16 MiB.
_TARGET_BLOCK_BYTES = 4 * 1024 * 1024
# Scoped VMEM headroom (≥ defaults on v6e/v7x, raises v5e's 16 MiB default).
_VMEM_LIMIT_BYTES = 32 * 1024 * 1024
# Below this element count a standalone Pallas pass costs more than it saves.
_MIN_PALLAS_ELEMENTS = 1024
# Largest lane width we consider when flattening (keeps block_rows >= 8 easy).
_MAX_LANE_WIDTH = 8192


def _pick_lane_width(total: int) -> int | None:
    """Largest multiple of 128 (<= _MAX_LANE_WIDTH) dividing `total`."""
    for w in range(_MAX_LANE_WIDTH, 127, -128):
        if total % w == 0:
            return w
    return None


def _activation_math(x, activation: str):
    if activation == "hardtanh":
        return jnp.clip(x, 0.0, 20.0)          # nn.Hardtanh(0, 20)
    if activation == "relu":
        return jnp.maximum(x, 0.0)
    if activation == "leaky_relu":
        return jnp.where(x > 0, x, 0.01 * x)   # nn.LeakyReLU default slope
    if activation == "elu":
        return jnp.where(x > 0, x, jnp.expm1(x))   # nn.ELU alpha=1.0
    if activation == "gelu":
        return jax.nn.gelu(x, approximate=False)   # nn.GELU (erf form)
    raise ValueError(f"unsupported activation: {activation}")


def _activation_kernel(x_ref, o_ref, *, activation: str, compute_f32: bool):
    x = x_ref[...]
    if compute_f32:
        # Only elu/gelu need the f32 round-trip (expm1/erf precision).
        x = x.astype(jnp.float32)
    y = _activation_math(x, activation)
    o_ref[...] = y.astype(o_ref.dtype)


class CNNExtractor:
    """JAX/Pallas port of kospeech CNNExtractor (activation-only base class)."""

    supported_activations = ("hardtanh", "relu", "elu", "leaky_relu", "gelu")

    def __init__(self, activation: str = "hardtanh") -> None:
        if activation not in self.supported_activations:
            raise KeyError(activation)
        self.activation = activation

    def _apply_activation(self, inputs: jax.Array) -> jax.Array:
        total = inputs.size
        lane_width = _pick_lane_width(total)
        compute_f32 = self.activation in ("elu", "gelu")

        if total < _MIN_PALLAS_ELEMENTS or lane_width is None:
            # Tiny / oddly-sized tensors: skip the Pallas launch + extra HBM
            # round trip; XLA fuses this elementwise op into its producer.
            x = inputs.astype(jnp.float32) if compute_f32 else inputs
            return _activation_math(x, self.activation).astype(inputs.dtype)

        rows = total // lane_width
        x2d = inputs.reshape(rows, lane_width)     # free: contiguous flatten

        itemsize = jnp.dtype(inputs.dtype).itemsize
        block_rows = (_TARGET_BLOCK_BYTES // (lane_width * itemsize)) // 8 * 8
        block_rows = max(8, block_rows)
        if block_rows >= rows:
            # Single row-block: full extent along the sublane axis is always
            # a legal block shape, regardless of (8, 128) divisibility.
            block_rows = rows

        grid = (pl.cdiv(rows, block_rows),)        # ragged last tile is masked

        kernel = functools.partial(
            _activation_kernel,
            activation=self.activation,
            compute_f32=compute_f32,
        )

        cost = pl.CostEstimate(
            flops=2 * total,
            transcendentals=total if compute_f32 else 0,
            bytes_accessed=2 * total * itemsize,
        )

        out2d = pl.pallas_call(
            kernel,
            out_shape=jax.ShapeDtypeStruct((rows, lane_width), inputs.dtype),
            grid=grid,
            in_specs=[pl.BlockSpec((block_rows, lane_width), lambda i: (i, 0))],
            out_specs=pl.BlockSpec((block_rows, lane_width), lambda i: (i, 0)),
            compiler_params=pltpu.CompilerParams(
                dimension_semantics=("parallel",),
                vmem_limit_bytes=_VMEM_LIMIT_BYTES,
            ),
            cost_estimate=cost,
        )(x2d)
        return out2d.reshape(inputs.shape)

    def forward(self, inputs: jax.Array, input_lengths: jax.Array):
        # Base-class forward is abstract in PyTorch; here we expose the only
        # concrete computation the module defines (the activation) and pass
        # lengths through unchanged.
        outputs = self._apply_activation(inputs)
        return outputs, input_lengths

    __call__ = forward


if __name__ == "__main__":
    key = jax.random.PRNGKey(0)
    k_small, k_big = jax.random.split(key)

    extractor = CNNExtractor(activation="hardtanh")

    # 1) Small NCHW demo input: batch=2, channels=4, freq=16, time=16 (f32).
    #    2048 elements → single lane-dense (1, 2048) Pallas block.
    x_small = jax.random.normal(k_small, (2, 4, 16, 16), dtype=jnp.float32) * 10.0
    lens_small = jnp.array([16, 12], dtype=jnp.int32)
    out_small, out_lens = extractor(x_small, lens_small)
    out_small = jax.block_until_ready(out_small)
    out_lens = jax.block_until_ready(out_lens)
    assert out_small.shape == x_small.shape
    assert out_small.dtype == x_small.dtype
    assert jnp.allclose(out_small, jnp.clip(x_small, 0.0, 20.0), atol=1e-6)
    assert jnp.array_equal(out_lens, lens_small)

    # 2) Larger bf16 input exercising the multi-block pipelined path
    #    (lane-dense 8192-wide slab, two grid steps, ragged last row-tile).
    x_big = (
        jax.random.normal(k_big, (8, 32, 64, 250), dtype=jnp.float32) * 10.0
    ).astype(jnp.bfloat16)
    lens_big = jnp.arange(250, 250 - 8, -1, dtype=jnp.int32)
    out_big, out_lens_big = extractor(x_big, lens_big)
    out_big = jax.block_until_ready(out_big)
    assert out_big.shape == x_big.shape
    assert out_big.dtype == jnp.bfloat16
    assert jnp.array_equal(out_big, jnp.clip(x_big, 0.0, 20.0))
    assert jnp.array_equal(out_lens_big, lens_big)

    print("KERNEL_OK")
</pallas_src>

<mosaic_0001>
module attributes {stable_mosaic.version = 11 : i64} {
  func.func @_activation_kernel(%arg0: i32, %arg1: memref<1x2048xf32, #tpu.memory_space<vmem>>, %arg2: memref<1x2048xf32, #tpu.memory_space<vmem>>) attributes {dimension_semantics = [#tpu.dimension_semantics<parallel>], iteration_bounds = array<i64: 1>, scalar_prefetch = 0 : i64, scratch_operands = 0 : i64, tpu.core_type = #tpu.core_type<tc>, window_params = [{transform_indices = @transform_0, window_bounds = array<i64: 1, 2048>}, {transform_indices = @transform_1, window_bounds = array<i64: 1, 2048>}]} {
    %c0 = arith.constant 0 : index
    %c0_0 = arith.constant 0 : index
    %0 = vector.load %arg1[%c0, %c0_0] : memref<1x2048xf32, #tpu.memory_space<vmem>>, vector<1x2048xf32>
    %cst = arith.constant 0.000000e+00 : f32
    %cst_1 = arith.constant 2.000000e+01 : f32
    %1 = vector.broadcast %cst : f32 to vector<1x2048xf32>
    %2 = arith.maximumf %1, %0 : vector<1x2048xf32>
    %3 = vector.broadcast %cst_1 : f32 to vector<1x2048xf32>
    %4 = arith.minimumf %3, %2 : vector<1x2048xf32>
    %c0_2 = arith.constant 0 : index
    %c0_3 = arith.constant 0 : index
    %5 = vector.load %arg2[%c0_2, %c0_3] : memref<1x2048xf32, #tpu.memory_space<vmem>>, vector<1x2048xf32>
    tpu.vector_store %arg2[%c0_2, %c0_3], %4 {strides = array<i32>} : memref<1x2048xf32, #tpu.memory_space<vmem>>, vector<1x2048xf32>,
    return
  }
  func.func @transform_0(%arg0: i32) -> (i32, i32) {
    %c0_i32 = arith.constant 0 : i32
    %c0_i32_0 = arith.constant 0 : i32
    return %arg0, %c0_i32 : i32, i32
  }
  func.func @transform_1(%arg0: i32) -> (i32, i32) {
    %c0_i32 = arith.constant 0 : i32
    %c0_i32_0 = arith.constant 0 : i32
    return %arg0, %c0_i32 : i32, i32
  }
}

</mosaic_0001>

<bundles_post_ra>
// kernel: tpu_custom_call.1
= control target key start
LH: loop header
LB: loop body
LE: loop exit
PB: predicated region body
PF: predicated region fallthrough
CT: control target
= control target key end

     0   :  { %6 = vsyncpa [#allocation3], 0  ;;  %s120_s0 = inlined_call_operand.hbm [shape: f32[1,2048], index: 0, kind: input, shape index: {}]   ;;  %s121_s1 = inlined_call_operand.hbm [shape: f32[1,2048], index: 1, kind: output, shape index: {}]  }
   0x1   :  { %7 = vsyncpa [#allocation4], 0  ;;  %s13_s8 = sshll.u32 %s120_s0, 4  ;;  %s102_s9 = smov [#allocation2]   ;;  %s14_s8 = int_to_ptr.hbm [resolvable:$true] %s13_s8 }
   0x2   :  { %s15_s10 = sshll.u32 %s102_s9, 4  ;;  %s16_s10 = int_to_ptr.vmem [resolvable:$true] %s15_s10 }
   0x3   :  { %18 = dma.hbm_to_vmem [thread:$0]  %s14_s8, 256, %s16_s10, [#allocation3]  }
   0x4   :  { %98 = dma.done.wait [#allocation3], 256  }
   0x5   :  { %99 = vsyncadd [#allocation3], 4294967040  ;;  %v23_v0 = vld [vmem:[#allocation2] sm:$0xff]  ;;  %v24_v1 = vld [vmem:[#allocation2 + $0x8] sm:$0xff]  ;;  %s103_s11 = smov [#allocation5]   ;;  %s38_s15 = sshll.u32 %s121_s1, 4  ;;  %s39_s15 = int_to_ptr.hbm [resolvable:$true] %s38_s15 }
   0x6   :  { %v25_v2 = vmax.f32 %v23_v0, 0.0  ;;  %v26_v3 = vmax.f32 %v24_v1, 0.0  ;;  %s36_s12 = sshll.u32 %s103_s11, 4  ;;  %s37_s12 = int_to_ptr.vmem [resolvable:$true] %s36_s12 }
   0x8   :  { %v27_v4 = vmin.f32 %v25_v2, 20.0  ;;  %v28_v5 = vmin.f32 %v26_v3, 20.0 }
   0xa   :  { %29 = vst [vmem:[#allocation5] sm:$0xff] %v27_v4 }
   0xb   :  { %30 = vst [vmem:[#allocation5 + $0x8] sm:$0xff] %v28_v5 }
   0xc   :  { %41 = dma.vmem_to_hbm [thread:$0]  %s37_s12, 256, %s39_s15, [#allocation4]  }
   0xd   :  { %100 = dma.done.wait [#allocation4], 256  }
   0xe   :  { %101 = vsyncadd [#allocation4], 4294967040 }
   0xf   :  { %46 = vsyncpa [#allocation3], 1 }
  0x10   :  { %47 = vsyncpa [#allocation4], 1 }

</bundles_post_ra>
